<compile_context>
chip_gen: v7x
topology: tpu7x:2x2x1
jax: 0.10.0
libtpu: 0.0.40
codegen_flags: <defaults>
</compile_context>

<pallas_src>
import functools

import jax
import jax.numpy as jnp
from jax.experimental import pallas as pl
from jax.experimental.pallas import tpu as pltpu

IN_DIM = 28 * 28 * 3   # 2352 (divisible by 8 -> valid sublane dim for the weight)
OUT_DIM = 10
N_PAD = 128            # one lane / MXU tile; only 10 of 128 columns are real
TILE_M = 512           # x tile ~4.8 MiB; x2 double-buffer + 1.2 MiB resident W
                       # stays well under the v7x 32 MiB scoped-VMEM default.


def _linear_kernel(x_ref, w_ref, b_ref, o_ref):
    # Fused matmul + bias. Weight/bias block indices are constant across the
    # M grid, so they stay resident in VMEM; only x / out tiles stream.
    o_ref[...] = (
        jnp.dot(x_ref[...], w_ref[...], preferred_element_type=jnp.float32)
        + b_ref[...]
    )


def prepare_params(weight, bias):
    """One-time layout prep (hoisted out of the per-call path).

    Stores the linear weight transposed and lane-padded to (IN_DIM, 128) and
    the bias as a (1, 128) row so the forward pass does zero re-padding.
    """
    w_pad = (
        jnp.zeros((IN_DIM, N_PAD), jnp.float32)
        .at[:, :OUT_DIM]
        .set(weight.T.astype(jnp.float32))
    )
    b_pad = (
        jnp.zeros((1, N_PAD), jnp.float32)
        .at[0, :OUT_DIM]
        .set(bias.astype(jnp.float32))
    )
    return w_pad, b_pad


@functools.partial(jax.jit, static_argnames=("tile_m",))
def robust_model_forward(x_nchw, w_pad, b_pad, *, tile_m=TILE_M):
    """x_nchw: (B, 3, 28, 28) f32; w_pad: (IN_DIM, 128); b_pad: (1, 128)."""
    B = x_nchw.shape[0]
    # Row-major flatten == torch's x.view(-1, 2352); no data movement.
    x2d = x_nchw.reshape(B, IN_DIM).astype(jnp.float32)

    if B <= tile_m:
        # Full-array block bypasses the (8,128) divisibility rule -> no
        # zero-fill copy of x for small batches.
        tm, m_blocks, m_total = B, 1, B
        x_in = x2d
    else:
        tm = tile_m
        m_blocks = pl.cdiv(B, tm)
        m_total = m_blocks * tm
        x_in = (
            x2d
            if m_total == B
            else jnp.zeros((m_total, IN_DIM), jnp.float32).at[:B].set(x2d)
        )

    cost = pl.CostEstimate(
        flops=2 * m_total * IN_DIM * N_PAD,
        transcendentals=0,
        bytes_accessed=4 * (m_total * IN_DIM + IN_DIM * N_PAD
                            + N_PAD + m_total * N_PAD),
    )

    out_p = pl.pallas_call(
        _linear_kernel,
        out_shape=jax.ShapeDtypeStruct((m_total, N_PAD), jnp.float32),
        grid_spec=pltpu.PrefetchScalarGridSpec(
            num_scalar_prefetch=0,
            grid=(m_blocks,),
            in_specs=[
                pl.BlockSpec((tm, IN_DIM), lambda i: (i, 0)),     # streamed x
                pl.BlockSpec((IN_DIM, N_PAD), lambda i: (0, 0)),  # resident W
                pl.BlockSpec((1, N_PAD), lambda i: (0, 0)),       # resident b
            ],
            out_specs=pl.BlockSpec((tm, N_PAD), lambda i: (i, 0)),
        ),
        compiler_params=pltpu.CompilerParams(
            dimension_semantics=("parallel",)),  # v7x: batch split over 2 TCs
        cost_estimate=cost,
    )(x_in, w_pad, b_pad)

    return out_p[:B, :OUT_DIM]


def init_params(key):
    """Deterministic init mirroring nn.Linear defaults: U(-1/sqrt(K), 1/sqrt(K))."""
    k_w, k_b = jax.random.split(key)
    bound = 1.0 / (IN_DIM ** 0.5)
    weight = jax.random.uniform(k_w, (OUT_DIM, IN_DIM), jnp.float32,
                                minval=-bound, maxval=bound)
    bias = jax.random.uniform(k_b, (OUT_DIM,), jnp.float32,
                              minval=-bound, maxval=bound)
    return weight, bias


if __name__ == "__main__":
    key = jax.random.PRNGKey(0)
    k_x, k_p, k_x2 = jax.random.split(key, 3)

    weight, bias = init_params(k_p)
    w_pad, b_pad = prepare_params(weight, bias)   # hoisted one-time padding

    # Small-batch path: full-array block, no x padding, grid=(1,).
    B = 2
    x = jax.random.normal(k_x, (B, 3, 28, 28), jnp.float32)
    out = jax.block_until_ready(robust_model_forward(x, w_pad, b_pad))
    ref = x.reshape(-1, IN_DIM) @ weight.T + bias
    assert out.shape == (B, OUT_DIM), out.shape
    assert jnp.allclose(out, ref, atol=1e-4, rtol=1e-4), "mismatch (small batch)"

    # Tiled-grid path (M grid + resident weight), tiny tile to keep it cheap.
    B2 = 20
    x2 = jax.random.normal(k_x2, (B2, 3, 28, 28), jnp.float32)
    out2 = jax.block_until_ready(
        robust_model_forward(x2, w_pad, b_pad, tile_m=8))
    ref2 = x2.reshape(-1, IN_DIM) @ weight.T + bias
    assert out2.shape == (B2, OUT_DIM), out2.shape
    assert jnp.allclose(out2, ref2, atol=1e-4, rtol=1e-4), "mismatch (tiled)"

    print("KERNEL_OK")
</pallas_src>

<mosaic_0001>
module attributes {stable_mosaic.version = 11 : i64} {
  func.func @_linear_kernel(%arg0: i32, %arg1: memref<2x2352xf32, #tpu.memory_space<vmem>>, %arg2: memref<2352x128xf32, #tpu.memory_space<vmem>>, %arg3: memref<1x128xf32, #tpu.memory_space<vmem>>, %arg4: memref<2x128xf32, #tpu.memory_space<vmem>>) attributes {dimension_semantics = [#tpu.dimension_semantics<parallel>], iteration_bounds = array<i64: 1>, scalar_prefetch = 0 : i64, scratch_operands = 0 : i64, tpu.core_type = #tpu.core_type<tc>, window_params = [{transform_indices = @transform_0, window_bounds = array<i64: 2, 2352>}, {pipeline_mode = #tpu.pipeline_mode<synchronous>, transform_indices = @transform_1, window_bounds = array<i64: 2352, 128>}, {pipeline_mode = #tpu.pipeline_mode<synchronous>, transform_indices = @transform_2, window_bounds = array<i64: 1, 128>}, {transform_indices = @transform_3, window_bounds = array<i64: 2, 128>}]} {
    %c0 = arith.constant 0 : index
    %c0_0 = arith.constant 0 : index
    %0 = vector.load %arg1[%c0, %c0_0] : memref<2x2352xf32, #tpu.memory_space<vmem>>, vector<2x2352xf32>
    %c0_1 = arith.constant 0 : index
    %c0_2 = arith.constant 0 : index
    %1 = vector.load %arg2[%c0_1, %c0_2] : memref<2352x128xf32, #tpu.memory_space<vmem>>, vector<2352x128xf32>
    %cst = arith.constant dense<0.000000e+00> : vector<2x128xf32>
    %2 = tpu.matmul %0, %1, %cst {dimension_numbers = #tpu.dot_dimension_numbers<[1], [0], [0], [1], [0, 0, 1, 1], [], []>} : vector<2x2352xf32>, vector<2352x128xf32>, vector<2x128xf32> -> vector<2x128xf32>
    %c0_3 = arith.constant 0 : index
    %c0_4 = arith.constant 0 : index
    %3 = vector.load %arg3[%c0_3, %c0_4] : memref<1x128xf32, #tpu.memory_space<vmem>>, vector<1x128xf32>
    %4 = vector.broadcast %3 : vector<1x128xf32> to vector<2x128xf32>
    %5 = arith.addf %2, %4 : vector<2x128xf32>
    %c0_5 = arith.constant 0 : index
    %c0_6 = arith.constant 0 : index
    %6 = vector.load %arg4[%c0_5, %c0_6] : memref<2x128xf32, #tpu.memory_space<vmem>>, vector<2x128xf32>
    tpu.vector_store %arg4[%c0_5, %c0_6], %5 {strides = array<i32>} : memref<2x128xf32, #tpu.memory_space<vmem>>, vector<2x128xf32>,
    return
  }
  func.func @transform_0(%arg0: i32) -> (i32, i32) {
    %c0_i32 = arith.constant 0 : i32
    %c0_i32_0 = arith.constant 0 : i32
    return %arg0, %c0_i32 : i32, i32
  }
  func.func @transform_1(%arg0: i32) -> (i32, i32) {
    %c0_i32 = arith.constant 0 : i32
    %c0_i32_0 = arith.constant 0 : i32
    %c0_i32_1 = arith.constant 0 : i32
    return %c0_i32, %c0_i32_0 : i32, i32
  }
  func.func @transform_2(%arg0: i32) -> (i32, i32) {
    %c0_i32 = arith.constant 0 : i32
    %c0_i32_0 = arith.constant 0 : i32
    %c0_i32_1 = arith.constant 0 : i32
    return %c0_i32, %c0_i32_0 : i32, i32
  }
  func.func @transform_3(%arg0: i32) -> (i32, i32) {
    %c0_i32 = arith.constant 0 : i32
    %c0_i32_0 = arith.constant 0 : i32
    return %arg0, %c0_i32 : i32, i32
  }
}

</mosaic_0001>

<bundles_post_ra>
// kernel: robust_model_forward.1
= control target key start
LH: loop header
LB: loop body
LE: loop exit
PB: predicated region body
PF: predicated region fallthrough
CT: control target
= control target key end

     0   :  { %8 = vsyncpa [#allocation3], 0  ;;  %s2028_s0 = inlined_call_operand.vmem [shape: f32[2,2352], index: 0, kind: input, shape index: {}]   ;;  %s2029_s1 = inlined_call_operand.hbm [shape: f32[2352,128], index: 1, kind: input, shape index: {}]   ;;  %s2030_s2 = inlined_call_operand.hbm [shape: f32[1,128], index: 2, kind: input, shape index: {}]   ;;  %s2031_s3 = inlined_call_operand.hbm [shape: f32[2,128], index: 3, kind: output, shape index: {}]  }
   0x1   :  { %9 = vsyncpa [#allocation6], 0 }
   0x2   :  { %10 = vsyncpa [#allocation4], 0  ;;  %s1896_s12 = smov [#allocation2]   ;;  %s1824_s16 = scalar_lea.hbm %s2029_s1, 37632 }
   0x3   :  { %s18_s13 = sshll.u32 %s1896_s12, 4  ;;  %p1825_p0 = scmp.ne.s32.totalorder %s2029_s1, %s1824_s16  ;;  %s19_s13 = int_to_ptr.vmem [resolvable:$true] %s18_s13 }
   0x4   :  { %p1828_p1 = scmp.lt.u32.totalorder %s1824_s16, %s2029_s1 }
   0x6   :  { %p1830_p2 = pnand %p1828_p1, %p1825_p0 }
   0x8   :  { %1833 = shalt.err (!%p1830_p2)
}
   0x9   :  { %s1834_s21 = scalar_lea.vmem %s19_s13, 37632  ;;  %p1839_p4 = scmp.lt.s32.totalorder %s19_s13, %s19_s13 }
   0xa   :  { %p1835_p3 = scmp.ne.s32.totalorder %s19_s13, %s1834_s21  ;;  %p1840_p5 = scmp.lt.s32.totalorder %s1834_s21, %s1834_s21 }
   0xc   :  { %p1841_p6 = por %p1840_p5, %p1839_p4 }
   0xe   :  { %p1842_p7 = pnand %p1841_p6, %p1835_p3 }
  0x10   :  { %1845 = shalt.err (!%p1842_p7)
}
  0x11   :  { %s1897_s22 = smov 128   ;;  %s1898_s23 = smov 8  }
  0x12   :  { %24 = dma.hbm_to_vmem [thread:$0]  %s2029_s1, 37632, %s19_s13, [#allocation3], %s1897_s22, %s1897_s22, %s1898_s23  }
  0x13   :  { %s1899_s26 = smov [#allocation5]   ;;  %s1846_s30 = scalar_lea.hbm %s2030_s2, 16 }
  0x14   :  { %s31_s27 = sshll.u32 %s1899_s26, 4  ;;  %p1847_p8 = scmp.ne.s32.totalorder %s2030_s2, %s1846_s30  ;;  %s32_s27 = int_to_ptr.vmem [resolvable:$true] %s31_s27 }
  0x15   :  { %p1850_p9 = scmp.lt.u32.totalorder %s1846_s30, %s2030_s2 }
  0x17   :  { %p1852_p10 = pnand %p1850_p9, %p1847_p8 }
  0x19   :  { %1855 = shalt.err (!%p1852_p10)
}
  0x1a   :  { %s1856_s8 = scalar_lea.vmem %s32_s27, 16  ;;  %s1860_s1 = scalar_lea.vmem %s32_s27, 32 }
  0x1b   :  { %p1857_p11 = scmp.ne.s32.totalorder %s32_s27, %s1856_s8  ;;  %p1861_p12 = scmp.lt.s32.totalorder %s32_s27, %s32_s27 }
  0x1c   :  { %p1862_p13 = scmp.lt.s32.totalorder %s1860_s1, %s1856_s8 }
  0x1e   :  { %p1863_p0 = por %p1862_p13, %p1861_p12 }
  0x20   :  { %p1864_p1 = pnand %p1863_p0, %p1857_p11 }
  0x22   :  { %1867 = shalt.err (!%p1864_p1)
}
  0x23   :  { %34 = dma.hbm_to_vmem [thread:$0]  %s2030_s2, 16, %s32_s27, [#allocation6]  }
  0x24   :  { %1890 = dma.done.wait [#allocation3], 37632  }
  0x25   :  { %1891 = vsyncadd [#allocation3], 4294929664 }
  0x26   :  { %1892 = dma.done.wait [#allocation6], 16  }
  0x27   :  { %1893 = vsyncadd [#allocation6], 4294967280  ;;  %v62_v0 = vld [vmem:[#allocation2 + $0x80] sm:$0xff]  ;;  %v63_v1 = vld [vmem:[#allocation2 + $0x88] sm:$0xff]  ;;  %v1900_v43 = vmov 1983009808   ;;  %v356_v45 = vlaneseq }
  0x28   :  { %v46_v2 = vld [vmem:[#allocation2] sm:$0xff]  ;;  %v1513_v3 = vpack.c.bf16 %v63_v1, %v62_v0  ;;  %v47_v4 = vld [vmem:[#allocation2 + $0x8] sm:$0xff]  ;;  %v64_v11 = vld [vmem:[#allocation2 + $0x90] sm:$0xff]  ;;  %v354_v44 = vunpack.c.l.s4 %v1900_v43  ;;  %vm1902_vm0 = vmmov 0   ;;  %vm454_vm1 = vcmask 392192  }
  0x29   :  { %v94_v5 = vld [vmem:[#allocation2 + $0x180] sm:$0xff]  ;;  %v95_v6 = vld [vmem:[#allocation2 + $0x188] sm:$0xff]  ;;  %v1515_v7 = vpack.c.bf16 %v47_v4, %v46_v2  ;;  %v65_v13 = vld [vmem:[#allocation2 + $0x98] sm:$0xff]  ;;  %v357_v60 = vshrl.u32 %v356_v45, 7 }
  0x2a   :  { %v1545_v8 = vpack.c.bf16 %v95_v6, %v94_v5  ;;  %v78_v9 = vld [vmem:[#allocation2 + $0x100] sm:$0xff]  ;;  %v79_v10 = vld [vmem:[#allocation2 + $0x108] sm:$0xff]  ;;  %1514 = vmatprep.subr.bf16.mxu0 %v1513_v3  ;;  %v48_v14 = vld [vmem:[#allocation2 + $0x10] sm:$0xff]  ;;  %v1517_v16 = vpack.c.bf16 %v65_v13, %v64_v11  ;;  %v355_v59 = vunpack.c.0.s8 %v354_v44 }
  0x2b   :  { %v1547_v12 = vpack.c.bf16 %v79_v10, %v78_v9  ;;  %v49_v15 = vld [vmem:[#allocation2 + $0x18] sm:$0xff]  ;;  %1516 = vmatpush3.bf16.msra.mxu0 %v1515_v7  ;;  %v96_v18 = vld [vmem:[#allocation2 + $0x190] sm:$0xff]  ;;  %v66_v23 = vld [vmem:[#allocation2 + $0xa0] sm:$0xff] }
  0x2c   :  { %1546 = vmatprep.subr.bf16.mxu1 %v1545_v8  ;;  %v1519_v17 = vpack.c.bf16 %v49_v15, %v48_v14  ;;  %v97_v19 = vld [vmem:[#allocation2 + $0x198] sm:$0xff]  ;;  %v80_v20 = vld [vmem:[#allocation2 + $0x110] sm:$0xff]  ;;  %v67_v24 = vld [vmem:[#allocation2 + $0xa8] sm:$0xff]  ;;  %1518 = vmatprep.subr.bf16.mxu0 %v1517_v16  ;;  %v1949_v10 = vsub.s32 %v355_v59, %v357_v60 }
  0x2d   :  { %1548 = vmatpush3.bf16.msra.mxu1 %v1547_v12  ;;  %v1549_v21 = vpack.c.bf16 %v97_v19, %v96_v18  ;;  %v81_v22 = vld [vmem:[#allocation2 + $0x118] sm:$0xff]  ;;  %v1521_v26 = vpack.c.bf16 %v67_v24, %v66_v23  ;;  %v50_v27 = vld [vmem:[#allocation2 + $0x20] sm:$0xff]  ;;  %v51_v28 = vld [vmem:[#allocation2 + $0x28] sm:$0xff] }
  0x2e   :  { %v1551_v25 = vpack.c.bf16 %v81_v22, %v80_v20  ;;  %v98_v29 = vld [vmem:[#allocation2 + $0x1a0] sm:$0xff]  ;;  %v99_v30 = vld [vmem:[#allocation2 + $0x1a8] sm:$0xff]  ;;  %v1523_v33 = vpack.c.bf16 %v51_v28, %v50_v27  ;;  %v68_v35 = vld [vmem:[#allocation2 + $0xb0] sm:$0xff] }
  0x2f   :  { %1550 = vmatprep.subr.bf16.mxu1 %v1549_v21  ;;  %v82_v31 = vld [vmem:[#allocation2 + $0x120] sm:$0xff]  ;;  %v83_v32 = vld [vmem:[#allocation2 + $0x128] sm:$0xff]  ;;  %1520 = vmatpush3.bf16.msra.mxu0 %v1519_v17  ;;  %v1553_v34 = vpack.c.bf16 %v99_v30, %v98_v29  ;;  %v69_v36 = vld [vmem:[#allocation2 + $0xb8] sm:$0xff] }
  0x30   :  { %v52_v37 = vld [vmem:[#allocation2 + $0x30] sm:$0xff]  ;;  %1522 = vmatprep.subr.bf16.mxu0 %v1521_v26  ;;  %v1555_v38 = vpack.c.bf16 %v83_v32, %v82_v31  ;;  %v1525_v39 = vpack.c.bf16 %v69_v36, %v68_v35  ;;  %v53_v40 = vld [vmem:[#allocation2 + $0x38] sm:$0xff]  ;;  %v70_v49 = vld [vmem:[#allocation2 + $0xc0] sm:$0xff] }
  0x31   :  { %1552 = vmatpush3.bf16.msra.mxu1 %v1551_v25  ;;  %v100_v41 = vld [vmem:[#allocation2 + $0x1b0] sm:$0xff]  ;;  %v101_v42 = vld [vmem:[#allocation2 + $0x1b8] sm:$0xff]  ;;  %v71_v50 = vld [vmem:[#allocation2 + $0xc8] sm:$0xff]  ;;  %v1527_v51 = vpack.c.bf16 %v53_v40, %v52_v37 }
  0x32   :  { %1554 = vmatprep.subr.bf16.mxu1 %v1553_v34  ;;  %v1557_v46 = vpack.c.bf16 %v101_v42, %v100_v41  ;;  %v84_v47 = vld [vmem:[#allocation2 + $0x130] sm:$0xff]  ;;  %v85_v48 = vld [vmem:[#allocation2 + $0x138] sm:$0xff]  ;;  %v102_v52 = vld [vmem:[#allocation2 + $0x1c0] sm:$0xff]  ;;  %v1529_v55 = vpack.c.bf16 %v71_v50, %v70_v49 }
  0x33   :  { %1524 = vmatpush3.bf16.msra.mxu0 %v1523_v33  ;;  %v103_v53 = vld [vmem:[#allocation2 + $0x1c8] sm:$0xff]  ;;  %v1559_v54 = vpack.c.bf16 %v85_v48, %v84_v47  ;;  %v54_v56 = vld [vmem:[#allocation2 + $0x40] sm:$0xff]  ;;  %v72_v63 = vld [vmem:[#allocation2 + $0xd0] sm:$0xff] }
  0x34   :  { %1526 = vmatprep.subr.bf16.mxu0 %v1525_v39  ;;  %v55_v57 = vld [vmem:[#allocation2 + $0x48] sm:$0xff]  ;;  %v86_v58 = vld [vmem:[#allocation2 + $0x140] sm:$0xff]  ;;  %v1561_v61 = vpack.c.bf16 %v103_v53, %v102_v52  ;;  %v73_v0 = vld [vmem:[#allocation2 + $0xd8] sm:$0xff] }
  0x35   :  { %1556 = vmatpush3.bf16.msra.mxu1 %v1555_v38  ;;  %v87_v62 = vld [vmem:[#allocation2 + $0x148] sm:$0xff]  ;;  %v104_v1 = vld [vmem:[#allocation2 + $0x1d0] sm:$0xff]  ;;  %v105_v2 = vld [vmem:[#allocation2 + $0x1d8] sm:$0xff]  ;;  %v1531_v3 = vpack.c.bf16 %v55_v57, %v54_v56  ;;  %v1533_v6 = vpack.c.bf16 %v73_v0, %v72_v63 }
  0x36   :  { %1558 = vmatprep.subr.bf16.mxu1 %v1557_v46  ;;  %v56_v4 = vld [vmem:[#allocation2 + $0x50] sm:$0xff]  ;;  %v1563_v5 = vpack.c.bf16 %v87_v62, %v86_v58  ;;  %v57_v7 = vld [vmem:[#allocation2 + $0x58] sm:$0xff]  ;;  %v1565_v11 = vpack.c.bf16 %v105_v2, %v104_v1  ;;  %v74_v12 = vld [vmem:[#allocation2 + $0xe0] sm:$0xff] }
  0x37   :  { %1528 = vmatpush3.bf16.msra.mxu0 %v1527_v51  ;;  %v88_v8 = vld [vmem:[#allocation2 + $0x150] sm:$0xff]  ;;  %v89_v9 = vld [vmem:[#allocation2 + $0x158] sm:$0xff]  ;;  %v75_v13 = vld [vmem:[#allocation2 + $0xe8] sm:$0xff]  ;;  %v1535_v16 = vpack.c.bf16 %v57_v7, %v56_v4 }
  0x38   :  { %1530 = vmatprep.subr.bf16.mxu0 %v1529_v55  ;;  %v106_v14 = vld [vmem:[#allocation2 + $0x1e0] sm:$0xff]  ;;  %v107_v15 = vld [vmem:[#allocation2 + $0x1e8] sm:$0xff]  ;;  %v1567_v17 = vpack.c.bf16 %v89_v9, %v88_v8  ;;  %v1537_v19 = vpack.c.bf16 %v75_v13, %v74_v12  ;;  %v76_v27 = vld [vmem:[#allocation2 + $0xf0] sm:$0xff] }
  0x39   :  { %1560 = vmatpush3.bf16.msra.mxu1 %v1559_v54  ;;  %v41_v18 = vld [vmem:[%s2028_s0] sm:$0xff]  ;;  %v59_v21 = vld [vmem:[#allocation2 + $0x68] sm:$0xff]  ;;  %v1569_v25 = vpack.c.bf16 %v107_v15, %v106_v14  ;;  %v77_v28 = vld [vmem:[#allocation2 + $0xf8] sm:$0xff] }
  0x3a   :  { %1562 = vmatprep.subr.bf16.mxu1 %v1561_v61  ;;  %v58_v20 = vld [vmem:[#allocation2 + $0x60] sm:$0xff]  ;;  %v359_v23 = vrot.slane %v41_v18, %v1949_v10  ;;  %v352_v24 = vcombine.high %v41_v18, %v41_v18  ;;  %v91_v26 = vld [vmem:[#allocation2 + $0x168] sm:$0xff]  ;;  %v108_v29 = vld [vmem:[#allocation2 + $0x1f0] sm:$0xff]  ;;  %v1541_v35 = vpack.c.bf16 %v77_v28, %v76_v27 }
  0x3b   :  { %1532 = vmatpush3.bf16.msra.mxu0 %v1531_v3  ;;  %v90_v22 = vld [vmem:[#allocation2 + $0x160] sm:$0xff]  ;;  %v109_v30 = vld [vmem:[#allocation2 + $0x1f8] sm:$0xff]  ;;  %v1539_v33 = vpack.c.bf16 %v59_v21, %v58_v20  ;;  %v60_v36 = vld [vmem:[#allocation2 + $0x70] sm:$0xff] }
  0x3c   :  { %1534 = vmatprep.subr.bf16.mxu0 %v1533_v6  ;;  %v367_v31 = vcombine.high %v359_v23, %v359_v23  ;;  %v366_v32 = vrot.slane %v352_v24, %v1949_v10  ;;  %v1571_v34 = vpack.c.bf16 %v91_v26, %v90_v22  ;;  %v61_v37 = vld [vmem:[#allocation2 + $0x78] sm:$0xff]  ;;  %v92_v38 = vld [vmem:[#allocation2 + $0x170] sm:$0xff]  ;;  %v1573_v40 = vpack.c.bf16 %v109_v30, %v108_v29  ;;  %v126_v42 = vld [vmem:[#allocation2 + $0x280] sm:$0xff] }
  0x3d   :  { %1564 = vmatpush3.bf16.msra.mxu1 %v1563_v5  ;;  %v93_v41 = vld [vmem:[#allocation2 + $0x178] sm:$0xff]  ;;  %v127_v43 = vld [vmem:[#allocation2 + $0x288] sm:$0xff]  ;;  %v158_v44 = vld [vmem:[#allocation2 + $0x380] sm:$0xff]  ;;  %v1543_v46 = vpack.c.bf16 %v61_v37, %v60_v36 }
  0x3e   :  { %1566 = vmatprep.subr.bf16.mxu1 %v1565_v11  ;;  %v368_v39 = vcombine.high %v366_v32, %v366_v32  ;;  %521 = vmatprep.mubr.f32.mxu0 %v367_v31  ;;  %v159_v45 = vld [vmem:[#allocation2 + $0x388] sm:$0xff]  ;;  %v1575_v47 = vpack.c.bf16 %v93_v41, %v92_v38  ;;  %v1577_v48 = vpack.c.bf16 %v127_v43, %v126_v42  ;;  %v110_v49 = vld [vmem:[#allocation2 + $0x200] sm:$0xff]  ;;  %v128_v54 = vld [vmem:[#allocation2 + $0x290] sm:$0xff] }
  0x3f   :  { %1536 = vmatpush3.bf16.msra.mxu0 %v1535_v16  ;;  %v111_v50 = vld [vmem:[#allocation2 + $0x208] sm:$0xff]  ;;  %v142_v51 = vld [vmem:[#allocation2 + $0x300] sm:$0xff]  ;;  %v1609_v52 = vpack.c.bf16 %v159_v45, %v158_v44  ;;  %v129_v55 = vld [vmem:[#allocation2 + $0x298] sm:$0xff] }
  0x40   :  { %1538 = vmatprep.subr.bf16.mxu0 %v1537_v19  ;;  %591 = vmatprep.mubr.f32.mxu1 %v368_v39  ;;  %v143_v53 = vld [vmem:[#allocation2 + $0x308] sm:$0xff]  ;;  %v160_v56 = vld [vmem:[#allocation2 + $0x390] sm:$0xff]  ;;  %v161_v57 = vld [vmem:[#allocation2 + $0x398] sm:$0xff]  ;;  %v1579_v58 = vpack.c.bf16 %v111_v50, %v110_v49  ;;  %v1581_v60 = vpack.c.bf16 %v129_v55, %v128_v54 }
  0x41   :  { %1568 = vmatpush3.bf16.msra.mxu1 %v1567_v17  ;;  %v1611_v59 = vpack.c.bf16 %v143_v53, %v142_v51  ;;  %v112_v61 = vld [vmem:[#allocation2 + $0x210] sm:$0xff]  ;;  %v113_v62 = vld [vmem:[#allocation2 + $0x218] sm:$0xff]  ;;  %v1613_v0 = vpack.c.bf16 %v161_v57, %v160_v56  ;;  %v130_v2 = vld [vmem:[#allocation2 + $0x2a0] sm:$0xff] }
  0x42   :  { %1570 = vmatprep.subr.bf16.mxu1 %v1569_v25  ;;  %v144_v63 = vld [vmem:[#allocation2 + $0x310] sm:$0xff]  ;;  %v145_v1 = vld [vmem:[#allocation2 + $0x318] sm:$0xff]  ;;  %v131_v3 = vld [vmem:[#allocation2 + $0x2a8] sm:$0xff]  ;;  %v1583_v6 = vpack.c.bf16 %v113_v62, %v112_v61 }
  0x43   :  { %1540 = vmatpush3.bf16.msra.mxu0 %v1539_v33  ;;  %v162_v4 = vld [vmem:[#allocation2 + $0x3a0] sm:$0xff]  ;;  %v163_v5 = vld [vmem:[#allocation2 + $0x3a8] sm:$0xff]  ;;  %v1615_v7 = vpack.c.bf16 %v145_v1, %v144_v63  ;;  %v1585_v8 = vpack.c.bf16 %v131_v3, %v130_v2  ;;  %v132_v15 = vld [vmem:[#allocation2 + $0x2b0] sm:$0xff] }
  0x44   :  { %1542 = vmatprep.subr.bf16.mxu0 %v1541_v35  ;;  %v114_v9 = vld [vmem:[#allocation2 + $0x220] sm:$0xff]  ;;  %v115_v11 = vld [vmem:[#allocation2 + $0x228] sm:$0xff]  ;;  %v1617_v13 = vpack.c.bf16 %v163_v5, %v162_v4  ;;  %v133_v16 = vld [vmem:[#allocation2 + $0x2b8] sm:$0xff] }
  0x45   :  { %1572 = vmatpush3.bf16.msra.mxu1 %v1571_v34  ;;  %v146_v12 = vld [vmem:[#allocation2 + $0x320] sm:$0xff]  ;;  %v147_v14 = vld [vmem:[#allocation2 + $0x328] sm:$0xff]  ;;  %v164_v17 = vld [vmem:[#allocation2 + $0x3b0] sm:$0xff]  ;;  %v1587_v19 = vpack.c.bf16 %v115_v11, %v114_v9  ;;  %v1589_v22 = vpack.c.bf16 %v133_v16, %v132_v15 }
  0x46   :  { %1574 = vmatprep.subr.bf16.mxu1 %v1573_v40  ;;  %v165_v18 = vld [vmem:[#allocation2 + $0x3b8] sm:$0xff]  ;;  %v116_v20 = vld [vmem:[#allocation2 + $0x230] sm:$0xff]  ;;  %v1619_v21 = vpack.c.bf16 %v147_v14, %v146_v12  ;;  %v134_v27 = vld [vmem:[#allocation2 + $0x2c0] sm:$0xff] }
  0x47   :  { %1544 = vmatpush3.bf16.msra.mxu0 %v1543_v46  ;;  %v148_v24 = vld [vmem:[#allocation2 + $0x330] sm:$0xff]  ;;  %v149_v25 = vld [vmem:[#allocation2 + $0x338] sm:$0xff]  ;;  %v1621_v26 = vpack.c.bf16 %v165_v18, %v164_v17  ;;  %v135_v28 = vld [vmem:[#allocation2 + $0x2c8] sm:$0xff] }
  0x48   :  { %1578 = vmatprep.subr.bf16.mxu0 %v1577_v48  ;;  %v42_v29 = vld [vmem:[%s2028_s0 + $0x8] sm:$0xff]  ;;  %v166_v30 = vld [vmem:[#allocation2 + $0x3c0] sm:$0xff]  ;;  %v1623_v35 = vpack.c.bf16 %v149_v25, %v148_v24  ;;  %v1593_v36 = vpack.c.bf16 %v135_v28, %v134_v27  ;;  %v136_v44 = vld [vmem:[#allocation2 + $0x2d0] sm:$0xff] }
  0x49   :  { %1576 = vmatpush3.bf16.msra.mxu1 %v1575_v47  ;;  %v167_v31 = vld [vmem:[#allocation2 + $0x3c8] sm:$0xff]  ;;  %v369_v33 = vcombine.high %v42_v29, %v42_v29  ;;  %v118_v37 = vld [vmem:[#allocation2 + $0x240] sm:$0xff]  ;;  %v137_v45 = vld [vmem:[#allocation2 + $0x2d8] sm:$0xff] }
  0x4a   :  { %1610 = vmatprep.subr.bf16.mxu1 %v1609_v52  ;;  %522 = vmatmul.mubr.f32.vlgmr.msra.gmra.mrb[0].mxu0 %v359_v23  ;;  %v117_v23 = vld [vmem:[#allocation2 + $0x238] sm:$0xff]  ;;  %v119_v38 = vld [vmem:[#allocation2 + $0x248] sm:$0xff]  ;;  %v150_v39 = vld [vmem:[#allocation2 + $0x340] sm:$0xff]  ;;  %v1625_v42 = vpack.c.bf16 %v167_v31, %v166_v30  ;;  %v1597_v51 = vpack.c.bf16 %v137_v45, %v136_v44 }
  0x4b   :  { %1580 = vmatpush3.bf16.msra.mxu0 %v1579_v58  ;;  %v1591_v34 = vpack.c.bf16 %v117_v23, %v116_v20  ;;  %v1965_v41 = vrot.slane %v369_v33, %v1949_v10  ;;  %v151_v43 = vld [vmem:[#allocation2 + $0x348] sm:$0xff]  ;;  %v168_v46 = vld [vmem:[#allocation2 + $0x3d0] sm:$0xff]  ;;  %v169_v47 = vld [vmem:[#allocation2 + $0x3d8] sm:$0xff]  ;;  %v1595_v49 = vpack.c.bf16 %v119_v38, %v118_v37 }
  0x4c   :  { %592 = vmatmul.mubr.f32.vlgmr.msra.gmra.mrb[0].mxu1 %v366_v32  ;;  %1582 = vmatprep.subr.bf16.mxu0 %v1581_v60  ;;  %v1960_v32 = vrot.slane %v42_v29, %v1949_v10  ;;  %v1627_v50 = vpack.c.bf16 %v151_v43, %v150_v39  ;;  %v120_v52 = vld [vmem:[#allocation2 + $0x250] sm:$0xff]  ;;  %v121_v53 = vld [vmem:[#allocation2 + $0x258] sm:$0xff]  ;;  %v1629_v55 = vpack.c.bf16 %v169_v47, %v168_v46  ;;  %v138_v57 = vld [vmem:[#allocation2 + $0x2e0] sm:$0xff] }
  0x4d   :  { %1612 = vmatpush3.bf16.msra.mxu1 %v1611_v59  ;;  %v385_v48 = vcombine.high %v1965_v41, %v1965_v41  ;;  %v152_v54 = vld [vmem:[#allocation2 + $0x350] sm:$0xff]  ;;  %v153_v56 = vld [vmem:[#allocation2 + $0x358] sm:$0xff]  ;;  %v139_v58 = vld [vmem:[#allocation2 + $0x2e8] sm:$0xff]  ;;  %v1599_v61 = vpack.c.bf16 %v121_v53, %v120_v52 }
  0x4e   :  { %1614 = vmatprep.subr.bf16.mxu1 %v1613_v0  ;;  %v384_v40 = vcombine.high %v1960_v32, %v1960_v32  ;;  %v170_v59 = vld [vmem:[#allocation2 + $0x3e0] sm:$0xff]  ;;  %v171_v60 = vld [vmem:[#allocation2 + $0x3e8] sm:$0xff]  ;;  %v1631_v62 = vpack.c.bf16 %v153_v56, %v152_v54  ;;  %v1601_v63 = vpack.c.bf16 %v139_v58, %v138_v57  ;;  %v140_v5 = vld [vmem:[#allocation2 + $0x2f0] sm:$0xff] }
  0x4f   :  { %1584 = vmatpush3.bf16.msra.mxu0 %v1583_v6  ;;  %731 = vmatprep.mubr.f32.mxu1 %v385_v48  ;;  %v122_v0 = vld [vmem:[#allocation2 + $0x260] sm:$0xff]  ;;  %v123_v1 = vld [vmem:[#allocation2 + $0x268] sm:$0xff]  ;;  %v1633_v3 = vpack.c.bf16 %v171_v60, %v170_v59  ;;  %v141_v6 = vld [vmem:[#allocation2 + $0x2f8] sm:$0xff] }
  0x50   :  { %1586 = vmatprep.subr.bf16.mxu0 %v1585_v8  ;;  %661 = vmatprep.mubr.f32.mxu0 %v384_v40  ;;  %v154_v2 = vld [vmem:[#allocation2 + $0x360] sm:$0xff]  ;;  %v155_v4 = vld [vmem:[#allocation2 + $0x368] sm:$0xff]  ;;  %v173_v8 = vld [vmem:[#allocation2 + $0x3f8] sm:$0xff]  ;;  %v1603_v9 = vpack.c.bf16 %v123_v1, %v122_v0  ;;  %v1605_v12 = vpack.c.bf16 %v141_v6, %v140_v5 }
  0x51   :  { %1616 = vmatpush3.bf16.msra.mxu1 %v1615_v7  ;;  %v172_v7 = vld [vmem:[#allocation2 + $0x3f0] sm:$0xff]  ;;  %v1635_v11 = vpack.c.bf16 %v155_v4, %v154_v2  ;;  %v125_v14 = vld [vmem:[#allocation2 + $0x278] sm:$0xff]  ;;  %v190_v18 = vld [vmem:[#allocation2 + $0x480] sm:$0xff] }
  0x52   :  { %1618 = vmatprep.subr.bf16.mxu1 %v1617_v13  ;;  %v124_v13 = vld [vmem:[#allocation2 + $0x270] sm:$0xff]  ;;  %v1637_v16 = vpack.c.bf16 %v173_v8, %v172_v7  ;;  %v157_v17 = vld [vmem:[#allocation2 + $0x378] sm:$0xff]  ;;  %v222_v20 = vld [vmem:[#allocation2 + $0x580] sm:$0xff] }
  0x53   :  { %1588 = vmatpush3.bf16.msra.mxu0 %v1587_v19  ;;  %v156_v15 = vld [vmem:[#allocation2 + $0x370] sm:$0xff]  ;;  %v191_v19 = vld [vmem:[#allocation2 + $0x488] sm:$0xff]  ;;  %v174_v23 = vld [vmem:[#allocation2 + $0x400] sm:$0xff] }
  0x54   :  { %1590 = vmatprep.subr.bf16.mxu0 %v1589_v22  ;;  %v1607_v22 = vpack.c.bf16 %v125_v14, %v124_v13  ;;  %v1639_v24 = vpack.c.bf16 %v157_v17, %v156_v15  ;;  %v1641_v25 = vpack.c.bf16 %v191_v19, %v190_v18  ;;  %v206_v27 = vld [vmem:[#allocation2 + $0x500] sm:$0xff]  ;;  %v207_v28 = vld [vmem:[#allocation2 + $0x508] sm:$0xff]  ;;  %v192_v30 = vld [vmem:[#allocation2 + $0x490] sm:$0xff] }
  0x55   :  { %1620 = vmatpush3.bf16.msra.mxu1 %v1619_v21  ;;  %v223_v21 = vld [vmem:[#allocation2 + $0x588] sm:$0xff]  ;;  %v193_v31 = vld [vmem:[#allocation2 + $0x498] sm:$0xff]  ;;  %v224_v33 = vld [vmem:[#allocation2 + $0x590] sm:$0xff] }
  0x56   :  { %1622 = vmatprep.subr.bf16.mxu1 %v1621_v26  ;;  %v175_v26 = vld [vmem:[#allocation2 + $0x408] sm:$0xff]  ;;  %v1673_v29 = vpack.c.bf16 %v223_v21, %v222_v20  ;;  %v43_v37 = vld [vmem:[%s2028_s0 + $0x10] sm:$0xff]  ;;  %v1645_v38 = vpack.c.bf16 %v193_v31, %v192_v30  ;;  %v177_v40 = vld [vmem:[#allocation2 + $0x418] sm:$0xff] }
  0x57   :  { %1592 = vmatpush3.bf16.msra.mxu0 %v1591_v34  ;;  %v225_v34 = vld [vmem:[#allocation2 + $0x598] sm:$0xff]  ;;  %v176_v39 = vld [vmem:[#allocation2 + $0x410] sm:$0xff]  ;;  %v1973_v43 = vrot.slane %v43_v37, %v1949_v10  ;;  %v386_v44 = vcombine.high %v43_v37, %v43_v37  ;;  %v194_v47 = vld [vmem:[#allocation2 + $0x4a0] sm:$0xff] }
  0x58   :  { %1594 = vmatprep.subr.bf16.mxu0 %v1593_v36  ;;  %v1675_v36 = vpack.c.bf16 %v207_v28, %v206_v27  ;;  %v1677_v45 = vpack.c.bf16 %v225_v34, %v224_v33  ;;  %v209_v46 = vld [vmem:[#allocation2 + $0x518] sm:$0xff]  ;;  %v195_v48 = vld [vmem:[#allocation2 + $0x4a8] sm:$0xff]  ;;  %v1647_v53 = vpack.c.bf16 %v177_v40, %v176_v39  ;;  %v178_v56 = vld [vmem:[#allocation2 + $0x420] sm:$0xff] }
  0x59   :  { %1624 = vmatpush3.bf16.msra.mxu1 %v1623_v35  ;;  %v1643_v35 = vpack.c.bf16 %v175_v26, %v174_v23  ;;  %v1979_v52 = vrot.slane %v386_v44, %v1949_v10  ;;  %v179_v57 = vld [vmem:[#allocation2 + $0x428] sm:$0xff]  ;;  %v210_v58 = vld [vmem:[#allocation2 + $0x520] sm:$0xff]  ;;  %v229_v0 = vld [vmem:[#allocation2 + $0x5b8] sm:$0xff] }
  0x5a   :  { %1626 = vmatprep.subr.bf16.mxu1 %v1625_v42  ;;  %v208_v42 = vld [vmem:[#allocation2 + $0x510] sm:$0xff]  ;;  %v211_v60 = vld [vmem:[#allocation2 + $0x528] sm:$0xff]  ;;  %v181_v4 = vld [vmem:[#allocation2 + $0x438] sm:$0xff] }
  0x5b   :  { %1596 = vmatpush3.bf16.msra.mxu0 %v1595_v49  ;;  %v226_v49 = vld [vmem:[#allocation2 + $0x5a0] sm:$0xff]  ;;  %v1679_v54 = vpack.c.bf16 %v209_v46, %v208_v42  ;;  %v1683_v1 = vpack.c.bf16 %v211_v60, %v210_v58  ;;  %v212_v5 = vld [vmem:[#allocation2 + $0x530] sm:$0xff]  ;;  %v213_v7 = vld [vmem:[#allocation2 + $0x538] sm:$0xff] }
  0x5c   :  { %1598 = vmatprep.subr.bf16.mxu0 %v1597_v51  ;;  %v401_v51 = vcombine.high %v1973_v43, %v1973_v43  ;;  %v198_v8 = vld [vmem:[#allocation2 + $0x4c0] sm:$0xff]  ;;  %v1687_v14 = vpack.c.bf16 %v213_v7, %v212_v5  ;;  %v183_v17 = vld [vmem:[#allocation2 + $0x448] sm:$0xff]  ;;  %v200_v21 = vld [vmem:[#allocation2 + $0x4d0] sm:$0xff] }
  0x5d   :  { %1628 = vmatpush3.bf16.msra.mxu1 %v1627_v50  ;;  %v227_v50 = vld [vmem:[#allocation2 + $0x5a8] sm:$0xff]  ;;  %v214_v18 = vld [vmem:[#allocation2 + $0x540] sm:$0xff]  ;;  %v232_v23 = vld [vmem:[#allocation2 + $0x5d0] sm:$0xff] }
  0x5e   :  { %1630 = vmatprep.subr.bf16.mxu1 %v1629_v55  ;;  %v1649_v55 = vpack.c.bf16 %v195_v48, %v194_v47  ;;  %v1681_v59 = vpack.c.bf16 %v227_v50, %v226_v49  ;;  %v215_v20 = vld [vmem:[#allocation2 + $0x548] sm:$0xff]  ;;  %v184_v28 = vld [vmem:[#allocation2 + $0x450] sm:$0xff]  ;;  %v217_v33 = vld [vmem:[#allocation2 + $0x558] sm:$0xff] }
  0x5f   :  { %1600 = vmatpush3.bf16.msra.mxu0 %v1599_v61  ;;  %v196_v61 = vld [vmem:[#allocation2 + $0x4b0] sm:$0xff]  ;;  %v1691_v26 = vpack.c.bf16 %v215_v20, %v214_v18  ;;  %v202_v34 = vld [vmem:[#allocation2 + $0x4e0] sm:$0xff]  ;;  %v235_v37 = vld [vmem:[#allocation2 + $0x5e8] sm:$0xff] }
  0x60   :  { %1602 = vmatprep.subr.bf16.mxu0 %v1601_v63  ;;  %v228_v63 = vld [vmem:[#allocation2 + $0x5b0] sm:$0xff]  ;;  %v186_v42 = vld [vmem:[#allocation2 + $0x460] sm:$0xff]  ;;  %v187_v44 = vld [vmem:[#allocation2 + $0x468] sm:$0xff] }
  0x61   :  { %1632 = vmatpush3.bf16.msra.mxu1 %v1631_v62  ;;  %v197_v62 = vld [vmem:[#allocation2 + $0x4b8] sm:$0xff]  ;;  %v1685_v6 = vpack.c.bf16 %v229_v0, %v228_v63  ;;  %v216_v30 = vld [vmem:[#allocation2 + $0x550] sm:$0xff]  ;;  %v219_v47 = vld [vmem:[#allocation2 + $0x568] sm:$0xff] }
  0x62   :  { %1634 = vmatprep.subr.bf16.mxu1 %v1633_v3  ;;  %v1653_v2 = vpack.c.bf16 %v197_v62, %v196_v61  ;;  %v180_v3 = vld [vmem:[#allocation2 + $0x430] sm:$0xff]  ;;  %v1695_v39 = vpack.c.bf16 %v217_v33, %v216_v30  ;;  %v205_v49 = vld [vmem:[#allocation2 + $0x4f8] sm:$0xff]  ;;  %v254_v61 = vld [vmem:[#allocation2 + $0x680] sm:$0xff] }
  0x63   :  { %1604 = vmatpush3.bf16.msra.mxu0 %v1603_v9  ;;  %v199_v9 = vld [vmem:[#allocation2 + $0x4c8] sm:$0xff]  ;;  %v1655_v13 = vpack.c.bf16 %v181_v4, %v180_v3  ;;  %v204_v48 = vld [vmem:[#allocation2 + $0x4f0] sm:$0xff]  ;;  %v189_v58 = vld [vmem:[#allocation2 + $0x478] sm:$0xff] }
  0x64   :  { %1606 = vmatprep.subr.bf16.mxu0 %v1605_v12  ;;  %v231_v12 = vld [vmem:[#allocation2 + $0x5c8] sm:$0xff]  ;;  %v1657_v15 = vpack.c.bf16 %v199_v9, %v198_v8  ;;  %v236_v50 = vld [vmem:[#allocation2 + $0x5f0] sm:$0xff]  ;;  %v221_v60 = vld [vmem:[#allocation2 + $0x578] sm:$0xff] }
  0x65   :  { %1636 = vmatpush3.bf16.msra.mxu1 %v1635_v11  ;;  %v230_v11 = vld [vmem:[#allocation2 + $0x5c0] sm:$0xff]  ;;  %v255_v62 = vld [vmem:[#allocation2 + $0x688] sm:$0xff]  ;;  %v256_v9 = vld [vmem:[#allocation2 + $0x690] sm:$0xff] }
  0x66   :  { %1638 = vmatprep.subr.bf16.mxu1 %v1637_v16  ;;  %v182_v16 = vld [vmem:[#allocation2 + $0x440] sm:$0xff]  ;;  %v1689_v19 = vpack.c.bf16 %v231_v12, %v230_v11  ;;  %v287_v0 = vld [vmem:[#allocation2 + $0x788] sm:$0xff]  ;;  %v1705_v3 = vpack.c.bf16 %v255_v62, %v254_v61  ;;  %v257_v11 = vld [vmem:[#allocation2 + $0x698] sm:$0xff] }
  0x67   :  { %1608 = vmatpush3.bf16.msra.mxu0 %v1607_v22  ;;  %v201_v22 = vld [vmem:[#allocation2 + $0x4d8] sm:$0xff]  ;;  %v286_v63 = vld [vmem:[#allocation2 + $0x780] sm:$0xff]  ;;  %v239_v5 = vld [vmem:[#allocation2 + $0x608] sm:$0xff]  ;;  %v1709_v18 = vpack.c.bf16 %v257_v11, %v256_v9 }
  0x68   :  { %1642 = vmatprep.subr.bf16.mxu0 %v1641_v25  ;;  %v1659_v25 = vpack.c.bf16 %v183_v17, %v182_v16  ;;  %v1661_v27 = vpack.c.bf16 %v201_v22, %v200_v21  ;;  %v238_v4 = vld [vmem:[#allocation2 + $0x600] sm:$0xff]  ;;  %v1737_v7 = vpack.c.bf16 %v287_v0, %v286_v63  ;;  %v271_v8 = vld [vmem:[#allocation2 + $0x708] sm:$0xff]  ;;  %v241_v20 = vld [vmem:[#allocation2 + $0x618] sm:$0xff] }
  0x69   :  { %1640 = vmatpush3.bf16.msra.mxu1 %v1639_v24  ;;  %v233_v24 = vld [vmem:[#allocation2 + $0x5d8] sm:$0xff]  ;;  %v1707_v16 = vpack.c.bf16 %v239_v5, %v238_v4  ;;  %v272_v21 = vld [vmem:[#allocation2 + $0x710] sm:$0xff]  ;;  %v279_v62 = vld [vmem:[#allocation2 + $0x748] sm:$0xff] }
  0x6a   :  { %1674 = vmatprep.subr.bf16.mxu1 %v1673_v29  ;;  %662 = vmatmul.mubr.f32.vlgmr.msra.gmra.mrb[2].mxu0 %v1960_v32  ;;  %v402_v32 = vcombine.high %v1979_v52, %v1979_v52  ;;  %v185_v29 = vld [vmem:[#allocation2 + $0x458] sm:$0xff]  ;;  %v1693_v31 = vpack.c.bf16 %v233_v24, %v232_v23  ;;  %v258_v24 = vld [vmem:[#allocation2 + $0x6a0] sm:$0xff]  ;;  %v264_v63 = vld [vmem:[#allocation2 + $0x6d0] sm:$0xff] }
  0x6b   :  { %1644 = vmatpush3.bf16.msra.mxu0 %v1643_v35  ;;  %801 = vmatprep.mubr.f32.mxu0 %v401_v51  ;;  %v203_v35 = vld [vmem:[#allocation2 + $0x4e8] sm:$0xff]  ;;  %v237_v51 = vld [vmem:[#allocation2 + $0x5f8] sm:$0xff]  ;;  %v248_v5 = vld [vmem:[#allocation2 + $0x650] sm:$0xff] }
  0x6c   :  { %732 = vmatmul.mubr.f32.vlgmr.msra.gmra.mrb[2].mxu1 %v1965_v41  ;;  %1646 = vmatprep.subr.bf16.mxu0 %v1645_v38  ;;  %v1651_v41 = vpack.c.bf16 %v179_v57, %v178_v56  ;;  %v1663_v38 = vpack.c.bf16 %v185_v29, %v184_v28  ;;  %v1665_v40 = vpack.c.bf16 %v203_v35, %v202_v34  ;;  %v188_v57 = vld [vmem:[#allocation2 + $0x470] sm:$0xff]  ;;  %v273_v23 = vld [vmem:[#allocation2 + $0x718] sm:$0xff]  ;;  %v291_v28 = vld [vmem:[#allocation2 + $0x7a8] sm:$0xff] }
  0x6d   :  { %1676 = vmatpush3.bf16.msra.mxu1 %v1675_v36  ;;  %871 = vmatprep.mubr.f32.mxu1 %v402_v32  ;;  %v234_v36 = vld [vmem:[#allocation2 + $0x5e0] sm:$0xff]  ;;  %v1669_v56 = vpack.c.bf16 %v205_v49, %v204_v48  ;;  %v220_v32 = vld [vmem:[#allocation2 + $0x570] sm:$0xff]  ;;  %v243_v35 = vld [vmem:[#allocation2 + $0x628] sm:$0xff] }
  0x6e   :  { %1678 = vmatprep.subr.bf16.mxu1 %v1677_v45  ;;  %v218_v45 = vld [vmem:[#allocation2 + $0x560] sm:$0xff]  ;;  %v1697_v46 = vpack.c.bf16 %v235_v37, %v234_v36  ;;  %v276_v48 = vld [vmem:[#allocation2 + $0x730] sm:$0xff]  ;;  %v265_v0 = vld [vmem:[#allocation2 + $0x6d8] sm:$0xff] }
  0x6f   :  { %1648 = vmatpush3.bf16.msra.mxu0 %v1647_v53  ;;  %v1667_v53 = vpack.c.bf16 %v187_v44, %v186_v42  ;;  %v242_v34 = vld [vmem:[#allocation2 + $0x620] sm:$0xff]  ;;  %v293_v42 = vld [vmem:[#allocation2 + $0x7b8] sm:$0xff]  ;;  %v1725_v4 = vpack.c.bf16 %v265_v0, %v264_v63 }
  0x70   :  { %1650 = vmatprep.subr.bf16.mxu0 %v1649_v55  ;;  %v1699_v55 = vpack.c.bf16 %v219_v47, %v218_v45  ;;  %v274_v36 = vld [vmem:[#allocation2 + $0x720] sm:$0xff]  ;;  %v1715_v44 = vpack.c.bf16 %v243_v35, %v242_v34  ;;  %v245_v47 = vld [vmem:[#allocation2 + $0x638] sm:$0xff]  ;;  %v284_v35 = vld [vmem:[#allocation2 + $0x770] sm:$0xff] }
  0x71   :  { %1680 = vmatpush3.bf16.msra.mxu1 %v1679_v54  ;;  %v44_v54 = vld [vmem:[%s2028_s0 + $0x18] sm:$0xff]  ;;  %v266_v11 = vld [vmem:[#allocation2 + $0x6e0] sm:$0xff] }
  0x72   :  { %1682 = vmatprep.subr.bf16.mxu1 %v1681_v59  ;;  %v1701_v59 = vpack.c.bf16 %v237_v51, %v236_v50  ;;  %v1988_v12 = vrot.slane %v44_v54, %v1949_v10  ;;  %v277_v50 = vld [vmem:[#allocation2 + $0x738] sm:$0xff]  ;;  %v262_v51 = vld [vmem:[#allocation2 + $0x6c0] sm:$0xff] }
  0x73   :  { %1652 = vmatpush3.bf16.msra.mxu0 %v1651_v41  ;;  %v403_v41 = vcombine.high %v44_v54, %v44_v54  ;;  %v294_v54 = vld [vmem:[#allocation2 + $0x7c0] sm:$0xff]  ;;  %v281_v9 = vld [vmem:[#allocation2 + $0x758] sm:$0xff] }
  0x74   :  { %1654 = vmatprep.subr.bf16.mxu0 %v1653_v2  ;;  %v1703_v2 = vpack.c.bf16 %v221_v60, %v220_v32  ;;  %v246_v32 = vld [vmem:[#allocation2 + $0x640] sm:$0xff]  ;;  %v253_v34 = vld [vmem:[#allocation2 + $0x678] sm:$0xff] }
  0x75   :  { %1684 = vmatpush3.bf16.msra.mxu1 %v1683_v1  ;;  %v1671_v1 = vpack.c.bf16 %v189_v58, %v188_v57  ;;  %v1751_v57 = vpack.c.bf16 %v277_v50, %v276_v48  ;;  %v278_v60 = vld [vmem:[#allocation2 + $0x740] sm:$0xff] }
  0x76   :  { %1686 = vmatprep.subr.bf16.mxu1 %v1685_v6  ;;  %v270_v6 = vld [vmem:[#allocation2 + $0x700] sm:$0xff] }
  0x77   :  { %1656 = vmatpush3.bf16.msra.mxu0 %v1655_v13  ;;  %v288_v13 = vld [vmem:[#allocation2 + $0x790] sm:$0xff]  ;;  %v1739_v17 = vpack.c.bf16 %v271_v8, %v270_v6  ;;  %v249_v6 = vld [vmem:[#allocation2 + $0x658] sm:$0xff]  ;;  %v334_v48 = vld [vmem:[#allocation2 + $0x900] sm:$0xff] }
  0x78   :  { %1658 = vmatprep.subr.bf16.mxu0 %v1657_v15  ;;  %v1991_v15 = vrot.slane %v403_v41, %v1949_v10  ;;  %v296_v41 = vld [vmem:[#allocation2 + $0x7d0] sm:$0xff]  ;;  %v306_v0 = vld [vmem:[#allocation2 + $0x820] sm:$0xff] }
  0x79   :  { %1688 = vmatpush3.bf16.msra.mxu1 %v1687_v14  ;;  %v289_v14 = vld [vmem:[#allocation2 + $0x798] sm:$0xff] }
  0x7a   :  { %1690 = vmatprep.subr.bf16.mxu1 %v1689_v19  ;;  %v240_v19 = vld [vmem:[#allocation2 + $0x610] sm:$0xff]  ;;  %v1741_v22 = vpack.c.bf16 %v289_v14, %v288_v13  ;;  %v419_v29 = vcombine.high %v1991_v15, %v1991_v15  ;;  %v267_v13 = vld [vmem:[#allocation2 + $0x6e8] sm:$0xff]  ;;  %v298_v14 = vld [vmem:[#allocation2 + $0x7e0] sm:$0xff] }
  0x7b   :  { %1660 = vmatpush3.bf16.msra.mxu0 %v1659_v25  ;;  %v259_v25 = vld [vmem:[#allocation2 + $0x6a8] sm:$0xff]  ;;  %v1711_v30 = vpack.c.bf16 %v241_v20, %v240_v19  ;;  %v1729_v19 = vpack.c.bf16 %v267_v13, %v266_v11  ;;  %v250_v20 = vld [vmem:[#allocation2 + $0x660] sm:$0xff] }
  0x7c   :  { %1662 = vmatprep.subr.bf16.mxu0 %v1661_v27  ;;  %v290_v27 = vld [vmem:[#allocation2 + $0x7a0] sm:$0xff]  ;;  %v1713_v33 = vpack.c.bf16 %v259_v25, %v258_v24  ;;  %v283_v24 = vld [vmem:[#allocation2 + $0x768] sm:$0xff]  ;;  %v268_v25 = vld [vmem:[#allocation2 + $0x6f0] sm:$0xff] }
  0x7d   :  { %1692 = vmatpush3.bf16.msra.mxu1 %v1691_v26  ;;  %v418_v26 = vcombine.high %v1988_v12, %v1988_v12  ;;  %v1745_v37 = vpack.c.bf16 %v291_v28, %v290_v27  ;;  %v300_v27 = vld [vmem:[#allocation2 + $0x7f0] sm:$0xff]  ;;  %v301_v28 = vld [vmem:[#allocation2 + $0x7f8] sm:$0xff]  ;;  %v326_v13 = vld [vmem:[#allocation2 + $0x8c0] sm:$0xff] }
  0x7e   :  { %1694 = vmatprep.subr.bf16.mxu1 %v1693_v31  ;;  %v1743_v31 = vpack.c.bf16 %v273_v23, %v272_v21  ;;  %v251_v21 = vld [vmem:[#allocation2 + $0x668] sm:$0xff] }
  0x7f   :  { %1664 = vmatpush3.bf16.msra.mxu0 %v1663_v38  ;;  %v275_v38 = vld [vmem:[#allocation2 + $0x728] sm:$0xff] }
  0x80   :  { %1666 = vmatprep.subr.bf16.mxu0 %v1665_v40  ;;  %v292_v40 = vld [vmem:[#allocation2 + $0x7b0] sm:$0xff] }
  0x81   :  { %1696 = vmatpush3.bf16.msra.mxu1 %v1695_v39  ;;  %v261_v39 = vld [vmem:[#allocation2 + $0x6b8] sm:$0xff]  ;;  %v1749_v49 = vpack.c.bf16 %v293_v42, %v292_v40 }
  0x82   :  { %1698 = vmatprep.subr.bf16.mxu1 %v1697_v46  ;;  %v244_v46 = vld [vmem:[#allocation2 + $0x630] sm:$0xff] }
  0x83   :  { %1668 = vmatpush3.bf16.msra.mxu0 %v1667_v53  ;;  %v263_v53 = vld [vmem:[#allocation2 + $0x6c8] sm:$0xff] }
  0x84   :  { %1670 = vmatprep.subr.bf16.mxu0 %v1669_v56  ;;  %v1719_v56 = vpack.c.bf16 %v245_v47, %v244_v46  ;;  %v1721_v58 = vpack.c.bf16 %v263_v53, %v262_v51  ;;  %v320_v46 = vld [vmem:[#allocation2 + $0x890] sm:$0xff]  ;;  %v321_v47 = vld [vmem:[#allocation2 + $0x898] sm:$0xff] }
  0x85   :  { %1700 = vmatpush3.bf16.msra.mxu1 %v1699_v55  ;;  %v295_v55 = vld [vmem:[#allocation2 + $0x7c8] sm:$0xff]  ;;  %v1773_v53 = vpack.c.bf16 %v321_v47, %v320_v46 }
  0x86   :  { %1702 = vmatprep.subr.bf16.mxu1 %v1701_v59  ;;  %v247_v59 = vld [vmem:[#allocation2 + $0x648] sm:$0xff]  ;;  %v1753_v61 = vpack.c.bf16 %v295_v55, %v294_v54  ;;  %v304_v54 = vld [vmem:[#allocation2 + $0x810] sm:$0xff]  ;;  %v305_v55 = vld [vmem:[#allocation2 + $0x818] sm:$0xff] }
  0x87   :  { %1672 = vmatpush3.bf16.msra.mxu0 %v1671_v1  ;;  %v297_v1 = vld [vmem:[#allocation2 + $0x7d8] sm:$0xff] }
  0x88   :  { %1706 = vmatprep.subr.bf16.mxu0 %v1705_v3  ;;  %v1755_v3 = vpack.c.bf16 %v279_v62, %v278_v60  ;;  %v1757_v8 = vpack.c.bf16 %v297_v1, %v296_v41  ;;  %v337_v60 = vld [vmem:[#allocation2 + $0x918] sm:$0xff]  ;;  %v1775_v62 = vpack.c.bf16 %v305_v55, %v304_v54  ;;  %v307_v41 = vld [vmem:[#allocation2 + $0x828] sm:$0xff]  ;;  %v324_v1 = vld [vmem:[#allocation2 + $0x8b0] sm:$0xff] }
  0x89   :  { %1704 = vmatpush3.bf16.msra.mxu1 %v1703_v2  ;;  %v1723_v2 = vpack.c.bf16 %v247_v59, %v246_v32  ;;  %v1901_v32 = vmov 0.0|0.0   ;;  %v336_v59 = vld [vmem:[#allocation2 + $0x910] sm:$0xff] }
  0x8a   :  { %1738 = vmatprep.subr.bf16.mxu1 %v1737_v7  ;;  %802 = vmatmul.mubr.f32.vlgmr.msra.gmra.mrb[4].mxu0 %v1973_v43  ;;  %v260_v43 = vld [vmem:[#allocation2 + $0x6b0] sm:$0xff] }
  0x8b   :  { %1708 = vmatpush3.bf16.msra.mxu0 %v1707_v16  ;;  %941 = vmatprep.mubr.f32.mxu0 %v418_v26  ;;  %v1717_v45 = vpack.c.bf16 %v261_v39, %v260_v43  ;;  %v280_v7 = vld [vmem:[#allocation2 + $0x750] sm:$0xff]  ;;  %v299_v16 = vld [vmem:[#allocation2 + $0x7e8] sm:$0xff]  ;;  %v269_v26 = vld [vmem:[#allocation2 + $0x6f8] sm:$0xff] }
  0x8c   :  { %872 = vmatmul.mubr.f32.vlgmr.msra.gmra.mrb[4].mxu1 %v1979_v52  ;;  %1710 = vmatprep.subr.bf16.mxu0 %v1709_v18  ;;  %v1747_v52 = vpack.c.bf16 %v275_v38, %v274_v36  ;;  %v1759_v18 = vpack.c.bf16 %v281_v9, %v280_v7  ;;  %v1761_v23 = vpack.c.bf16 %v299_v16, %v298_v14  ;;  %v318_v38 = vld [vmem:[#allocation2 + $0x880] sm:$0xff]  ;;  %v319_v43 = vld [vmem:[#allocation2 + $0x888] sm:$0xff]  ;;  %v309_v9 = vld [vmem:[#allocation2 + $0x838] sm:$0xff] }
  0x8d   :  { %1740 = vmatpush3.bf16.msra.mxu1 %v1739_v17  ;;  %1011 = vmatprep.mubr.f32.mxu1 %v419_v29  ;;  %v1727_v17 = vpack.c.bf16 %v249_v6, %v248_v5  ;;  %v1731_v29 = vpack.c.bf16 %v251_v21, %v250_v20  ;;  %v1765_v36 = vpack.c.bf16 %v301_v28, %v300_v27  ;;  %v2002_v39 = vld [vmem:[%s2028_s0 + $0x20] sm:$0x3f]  ;;  %v339_v5 = vld [vmem:[#allocation2 + $0x928] sm:$0xff]  ;;  %v1903_v6 = vmov 0.0   ;;  %v328_v21 = vld [vmem:[#allocation2 + $0x8d0] sm:$0xff]  ;;  %s1904_s0 = smov [#allocation7]  }
  0x8e   :  { %1742 = vmatprep.subr.bf16.mxu1 %v1741_v22  ;;  %v282_v22 = vld [vmem:[#allocation2 + $0x760] sm:$0xff]  ;;  %v2006_v50 = vrot.slane %v2002_v39, %v1949_v10  ;;  %v327_v14 = vld [vmem:[#allocation2 + $0x8c8] sm:$0xff]  ;;  %s1164_s20 = sshll.u32 %s1904_s0, 4  ;;  %s1165_s20 = int_to_ptr.vmem [resolvable:$true] %s1164_s20 }
  0x8f   :  { %1712 = vmatpush3.bf16.msra.mxu0 %v1711_v30  ;;  %v1763_v30 = vpack.c.bf16 %v283_v24, %v282_v22  ;;  %v311_v20 = vld [vmem:[#allocation2 + $0x848] sm:$0xff]  ;;  %v329_v22 = vld [vmem:[#allocation2 + $0x8d8] sm:$0xff]  ;;  %v330_v27 = vld [vmem:[#allocation2 + $0x8e0] sm:$0xff]  ;;  %s1868_s21 = scalar_lea.vmem %s1165_s20, 32  ;;  %p1873_p3 = scmp.lt.s32.totalorder %s1165_s20, %s1165_s20 }
  0x90   :  { %1714 = vmatprep.subr.bf16.mxu0 %v1713_v33  ;;  %v252_v33 = vld [vmem:[#allocation2 + $0x670] sm:$0xff]  ;;  %v1789_v24 = vpack.c.bf16 %v329_v22, %v328_v21  ;;  %v331_v28 = vld [vmem:[#allocation2 + $0x8e8] sm:$0xff]  ;;  %p1869_p2 = scmp.ne.s32.totalorder %s1165_s20, %s1868_s21  ;;  %p1874_p4 = scmp.lt.s32.totalorder %s1868_s21, %s1868_s21 }
  0x91   :  { %1744 = vmatpush3.bf16.msra.mxu1 %v1743_v31  ;;  %v1733_v31 = vpack.c.bf16 %v269_v26, %v268_v25  ;;  %v1735_v40 = vpack.c.bf16 %v253_v34, %v252_v33  ;;  %v312_v25 = vld [vmem:[#allocation2 + $0x850] sm:$0xff]  ;;  %v313_v26 = vld [vmem:[#allocation2 + $0x858] sm:$0xff] }
  0x92   :  { %1746 = vmatprep.subr.bf16.mxu1 %v1745_v37  ;;  %v285_v37 = vld [vmem:[#allocation2 + $0x778] sm:$0xff]  ;;  %v332_v33 = vld [vmem:[#allocation2 + $0x8f0] sm:$0xff]  ;;  %p1875_p5 = por %p1874_p4, %p1873_p3 }
  0x93   :  { %1716 = vmatpush3.bf16.msra.mxu0 %v1715_v44  ;;  %v1767_v42 = vpack.c.bf16 %v285_v37, %v284_v35  ;;  %v1769_v44 = vpack.c.bf16 %v319_v43, %v318_v38  ;;  %v333_v34 = vld [vmem:[#allocation2 + $0x8f8] sm:$0xff]  ;;  %v316_v37 = vld [vmem:[#allocation2 + $0x870] sm:$0xff] }
  0x94   :  { %1718 = vmatprep.subr.bf16.mxu0 %v1717_v45  ;;  %v303_v45 = vld [vmem:[#allocation2 + $0x808] sm:$0xff]  ;;  %v317_v38 = vld [vmem:[#allocation2 + $0x878] sm:$0xff]  ;;  %p1876_p6 = pnand %p1875_p5, %p1869_p2 }
  0x95   :  { %1748 = vmatpush3.bf16.msra.mxu1 %v1747_v52  ;;  %v302_v52 = vld [vmem:[#allocation2 + $0x800] sm:$0xff]  ;;  %v1799_v43 = vpack.c.bf16 %v317_v38, %v316_v37 }
  0x96   :  { %1750 = vmatprep.subr.bf16.mxu1 %v1749_v49  ;;  %v335_v49 = vld [vmem:[#allocation2 + $0x908] sm:$0xff]  ;;  %v1771_v51 = vpack.c.bf16 %v303_v45, %v302_v52 }
  0x97   :  { %1720 = vmatpush3.bf16.msra.mxu0 %v1719_v56  ;;  %v322_v56 = vld [vmem:[#allocation2 + $0x8a0] sm:$0xff] }
  0x98   :  { %1722 = vmatprep.subr.bf16.mxu0 %v1721_v58  ;;  %v323_v58 = vld [vmem:[#allocation2 + $0x8a8] sm:$0xff] }
  0x99   :  { %1752 = vmatpush3.bf16.msra.mxu1 %v1751_v57  ;;  %v1802_v57 = vpack.c.bf16 %v335_v49, %v334_v48  ;;  %v1777_v63 = vpack.c.bf16 %v323_v58, %v322_v56 }
  0x9a   :  { %1754 = vmatprep.subr.bf16.mxu1 %v1753_v61  ;;  %v435_v61 = vcombine.high %v2006_v50, %v2006_v50 }
  0x9b   :  { %1724 = vmatpush3.bf16.msra.mxu0 %v1723_v2  ;;  %v1805_v2 = vpack.c.bf16 %v337_v60, %v336_v59 }
  0x9c   :  { %1726 = vmatprep.subr.bf16.mxu0 %v1725_v4  ;;  %v338_v4 = vld [vmem:[#allocation2 + $0x920] sm:$0xff] }
  0x9d   :  { %1756 = vmatpush3.bf16.msra.mxu1 %v1755_v3  ;;  %v325_v3 = vld [vmem:[#allocation2 + $0x8b8] sm:$0xff]  ;;  %v1808_v11 = vpack.c.bf16 %v339_v5, %v338_v4 }
  0x9e   :  { %1758 = vmatprep.subr.bf16.mxu1 %v1757_v8  ;;  %v1781_v7 = vpack.c.bf16 %v325_v3, %v324_v1  ;;  %v308_v8 = vld [vmem:[#allocation2 + $0x830] sm:$0xff] }
  0x9f   :  { %1728 = vmatpush3.bf16.msra.mxu0 %v1727_v17  ;;  %v1783_v16 = vpack.c.bf16 %v309_v9, %v308_v8 }
  0xa0   :  { %1730 = vmatprep.subr.bf16.mxu0 %v1729_v19  ;;  %v310_v19 = vld [vmem:[#allocation2 + $0x840] sm:$0xff] }
  0xa1   :  { %1760 = vmatpush3.bf16.msra.mxu1 %v1759_v18  ;;  %v1785_v18 = vpack.c.bf16 %v327_v14, %v326_v13 }
  0xa2   :  { %1762 = vmatprep.subr.bf16.mxu1 %v1761_v23  ;;  %v1787_v23 = vpack.c.bf16 %v311_v20, %v310_v19 }
  0xa3   :  { %1732 = vmatpush3.bf16.msra.mxu0 %v1731_v29  ;;  %v1791_v29 = vpack.c.bf16 %v313_v26, %v312_v25 }
  0xa4   :  { %1734 = vmatprep.subr.bf16.mxu0 %v1733_v31  ;;  %v315_v31 = vld [vmem:[#allocation2 + $0x868] sm:$0xff] }
  0xa5   :  { %1764 = vmatpush3.bf16.msra.mxu1 %v1763_v30  ;;  %v314_v30 = vld [vmem:[#allocation2 + $0x860] sm:$0xff] }
  0xa6   :  { %1766 = vmatprep.subr.bf16.mxu1 %v1765_v36  ;;  %v1795_v35 = vpack.c.bf16 %v315_v31, %v314_v30  ;;  %v1797_v36 = vpack.c.bf16 %v333_v34, %v332_v33 }
  0xa7   :  { %1736 = vmatpush3.bf16.msra.mxu0 %v1735_v40  ;;  %v1174_v40 = vld [vmem:[#allocation5] ss:$0 sm:$0xff] }
  0xa8   :  { %1770 = vmatprep.subr.bf16.mxu0 %v1769_v44 }
  0xa9   :  { %1768 = vmatpush3.bf16.msra.mxu1 %v1767_v42 }
  0xaa   :  { %1801 = vmatprep.subr.bf16.mxu1 %v1901_v32  ;;  %942 = vmatmul.mubr.f32.vlgmr.msra.gmra.mrb[6].mxu0 %v1988_v12  ;;  %v1779_v12 = vpack.c.bf16 %v307_v41, %v306_v0 }
  0xab   :  { %1772 = vmatpush3.bf16.msra.mxu0 %v1771_v51  ;;  %1081 = vmatprep.mubr.f32.mxu0 %v435_v61 }
  0xac   :  { %1012 = vmatmul.mubr.f32.vlgmr.msra.gmra.mrb[6].mxu1 %v1991_v15  ;;  %1774 = vmatprep.subr.bf16.mxu0 %v1773_v53  ;;  %v420_v15 = vcombine.high %v2002_v39, %v2002_v39 }
  0xad   :  { %1803 = vmatpush3.bf16.msra.mxu1 %v1802_v57  ;;  %1510 = vmatprep.mubr.msk.f32.mxu1 %vm1902_vm0, %v1903_v6 }
  0xae   :  { %1804 = vmatprep.subr.bf16.mxu1 %v1901_v32  ;;  %v434_v17 = vrot.slane %v420_v15, %v1949_v10  ;;  %v1793_v10 = vpack.c.bf16 %v331_v28, %v330_v27 }
  0xaf   :  { %1776 = vmatpush3.bf16.msra.mxu0 %v1775_v62 }
  0xb0   :  { %1778 = vmatprep.subr.bf16.mxu0 %v1777_v63 }
  0xb1   :  { %1806 = vmatpush3.bf16.msra.mxu1 %v1805_v2 }
  0xb2   :  { %1807 = vmatprep.subr.bf16.mxu1 %v1901_v32 }
  0xb3   :  { %1780 = vmatpush3.bf16.msra.mxu0 %v1779_v12 }
  0xb4   :  { %1782 = vmatprep.subr.bf16.mxu0 %v1781_v7 }
  0xb5   :  { %1809 = vmatpush3.bf16.msra.mxu1 %v1808_v11 }
  0xb7   :  { %1784 = vmatpush3.bf16.msra.mxu0 %v1783_v16 }
  0xb8   :  { %1511 = vmatmul.mubr.msk.f32.vlgmr.msra.gmra.mrb[8].mxu1 %vm454_vm1, %v434_v17  ;;  %1786 = vmatprep.subr.bf16.mxu0 %v1785_v18 }
  0xbb   :  { %1788 = vmatpush3.bf16.msra.mxu0 %v1787_v23 }
  0xbc   :  { %1790 = vmatprep.subr.bf16.mxu0 %v1789_v24 }
  0xbf   :  { %1792 = vmatpush3.bf16.msra.mxu0 %v1791_v29 }
  0xc0   :  { %1794 = vmatprep.subr.bf16.mxu0 %v1793_v10 }
  0xc3   :  { %1796 = vmatpush3.bf16.msra.mxu0 %v1795_v35 }
  0xc4   :  { %1798 = vmatprep.subr.bf16.mxu0 %v1797_v36 }
  0xc7   :  { %1800 = vmatpush3.bf16.msra.mxu0 %v1799_v43 }
  0xca   :  { %1082 = vmatmul.mubr.f32.vlgmr.msra.gmra.mrb[8].mxu0 %v2006_v50 }
 0x11d   :  { %v1208_v39 = vpop.f32.mrb[0].mxu0 }
 0x11e   :  { %v1209_v42 = vpop.f32.mrb[1].mxu0 }
 0x11f   :  { %v1243_v44 = vpop.f32.mrb[0].mxu1  ;;  %v1210_v52 = vadd.f32 %v1209_v42, %v1208_v39 }
 0x120   :  { %v1244_v45 = vpop.f32.mrb[1].mxu1 }
 0x121   :  { %v1245_v46 = vadd.f32 %v1244_v45, %v1243_v44  ;;  %v524_v47 = vadd.f32 %v1210_v52, %v1174_v40 }
 0x123   :  { %v594_v48 = vadd.f32 %v1245_v46, %v524_v47 }
 0x13d   :  { %v1278_v49 = vpop.f32.mrb[2].mxu0 }
 0x13e   :  { %v1279_v51 = vpop.f32.mrb[3].mxu0 }
 0x13f   :  { %v1313_v53 = vpop.f32.mrb[2].mxu1  ;;  %v1280_v54 = vadd.f32 %v1279_v51, %v1278_v49 }
 0x140   :  { %v1314_v55 = vpop.f32.mrb[3].mxu1 }
 0x141   :  { %v1315_v56 = vadd.f32 %v1314_v55, %v1313_v53  ;;  %v664_v57 = vadd.f32 %v1280_v54, %v594_v48 }
 0x143   :  { %v734_v58 = vadd.f32 %v1315_v56, %v664_v57 }
 0x15d   :  { %v1348_v32 = vpop.f32.mrb[4].mxu0 }
 0x15e   :  { %v1349_v59 = vpop.f32.mrb[5].mxu0 }
 0x15f   :  { %v1383_v50 = vpop.f32.mrb[4].mxu1  ;;  %v1350_v60 = vadd.f32 %v1349_v59, %v1348_v32 }
 0x160   :  { %v1384_v61 = vpop.f32.mrb[5].mxu1 }
 0x161   :  { %v1385_v62 = vadd.f32 %v1384_v61, %v1383_v50  ;;  %v804_v63 = vadd.f32 %v1350_v60, %v734_v58 }
 0x163   :  { %v874_v0 = vadd.f32 %v1385_v62, %v804_v63 }
 0x17d   :  { %v1418_v41 = vpop.f32.mrb[6].mxu0 }
 0x17e   :  { %v1419_v1 = vpop.f32.mrb[7].mxu0 }
 0x17f   :  { %v1453_v2 = vpop.f32.mrb[6].mxu1  ;;  %v1420_v3 = vadd.f32 %v1419_v1, %v1418_v41 }
 0x180   :  { %v1454_v4 = vpop.f32.mrb[7].mxu1 }
 0x181   :  { %v1455_v5 = vadd.f32 %v1454_v4, %v1453_v2  ;;  %v944_v6 = vadd.f32 %v1420_v3, %v874_v0 }
 0x183   :  { %v1014_v12 = vadd.f32 %v1455_v5, %v944_v6 }
 0x18b   :  { %v1153_v15 = vpop.f32.mrb[8].mxu1 }
 0x18c   :  { %v1512_v7 = vpop.f32.mrb[9].mxu1 }
 0x19d   :  { %v1488_v8 = vpop.f32.mrb[8].mxu0 }
 0x19e   :  { %v1489_v9 = vpop.f32.mrb[9].mxu0 }
 0x19f   :  { %v1490_v11 = vadd.f32 %v1489_v9, %v1488_v8 }
 0x1a1   :  { %v1084_v13 = vadd.f32 %v1490_v11, %v1014_v12 }
 0x1a3   :  { %v1154_v14 = vadd.f32 %v1153_v15, %v1084_v13 }
 0x1a5   :  { %1157 = vst [vmem:[#allocation7] sm:$0x3] %v1154_v14 }
 0x1a6   :  { %1879 = shalt.err (!%p1876_p6)
}
 0x1a7   :  { %s1880_s24 = scalar_lea.hbm %s2031_s3, 32 }
 0x1a8   :  { %p1881_p7 = scmp.ne.s32.totalorder %s2031_s3, %s1880_s24  ;;  %p1884_p8 = scmp.lt.u32.totalorder %s1880_s24, %s2031_s3 }
 0x1aa   :  { %p1886_p9 = pnand %p1884_p8, %p1881_p7 }
 0x1ac   :  { %1889 = shalt.err (!%p1886_p9)
}
 0x1ad   :  { %1167 = dma.vmem_to_hbm [thread:$0]  %s1165_s20, 32, %s2031_s3, [#allocation4]  }
 0x1ae   :  { %1894 = dma.done.wait [#allocation4], 32  }
 0x1af   :  { %1895 = vsyncadd [#allocation4], 4294967264 }
 0x1b0   :  { %1171 = vsyncpa [#allocation3], 1 }
 0x1b1   :  { %1172 = vsyncpa [#allocation6], 1 }
 0x1b2   :  { %1173 = vsyncpa [#allocation4], 1 }

</bundles_post_ra>
